<compile_context>
chip_gen: v7x
topology: tpu7x:2x2x1
jax: 0.10.0
libtpu: 0.0.40
codegen_flags: <defaults>
</compile_context>

<pallas_src>
import jax
import jax.numpy as jnp
from jax.experimental import pallas as pl
from jax.experimental.pallas import tpu as pltpu


# ----------------------------- fused Pallas kernel ----------------------------

def _lstm_cell(gates, h_prev, c_prev, mask, H):
    """One LSTM cell update from pre-activation gates (B, 4H).

    Gate column order is (i, f, o, g) -- reordered in the wrapper from torch's
    (i, f, g, o) so that sigmoid covers only the first 3H columns and tanh the
    last H.  `mask` (B,1) freezes h/c on padded steps (packed-sequence semantics).
    """
    sig = jax.nn.sigmoid(gates[:, :3 * H])      # EUP pass over 3H columns
    g = jnp.tanh(gates[:, 3 * H:])              # EUP pass over H columns
    i = sig[:, 0 * H:1 * H]
    f = sig[:, 1 * H:2 * H]
    o = sig[:, 2 * H:3 * H]
    c_new = f * c_prev + i * g
    h_new = o * jnp.tanh(c_new)
    h_upd = jnp.where(mask, h_new, h_prev)
    c_upd = jnp.where(mask, c_new, c_prev)
    return h_upd, c_upd


def _make_fused_kernel(num_layers, seq_len, hidden_dim, batch_tile):
    L, T, H, Bt = num_layers, seq_len, hidden_dim, batch_tile
    G = 4 * H

    def kernel(*refs):
        idx = 0
        xproj_ref = refs[idx]; idx += 1                      # (Bt, T*4H) f32
        lengths_ref = refs[idx]; idx += 1                    # (Bt, 1) int32
        w_hh_refs = refs[idx:idx + L]; idx += L              # (H, 4H) bf16 each
        w_ih_refs = refs[idx:idx + (L - 1)]; idx += L - 1    # (H, 4H) bf16, layers >= 1
        b_refs = refs[idx:idx + (L - 1)]; idx += L - 1       # (1, 4H) f32, layers >= 1
        head_bias_ref = refs[idx]; idx += 1                  # (Bt, Dmlp) f32
        w1h_ref = refs[idx]; idx += 1                        # (H, Dmlp) bf16
        w2_ref = refs[idx]; idx += 1                         # (Dmlp, Fp) bf16
        b2_ref = refs[idx]; idx += 1                         # (1, Fp) f32
        out_ref = refs[idx]; idx += 1                        # (Bt, Fp) f32

        # Loop-invariant loads hoisted once (JAX does not CSE these per step).
        lengths = lengths_ref[...]                           # (Bt, 1) int32
        w_hh = [w_hh_refs[l][...] for l in range(L)]
        w_ih = [w_ih_refs[l][...] for l in range(L - 1)]
        bias = [b_refs[l][...] for l in range(L - 1)]

        h = [jnp.zeros((Bt, H), jnp.float32) for _ in range(L)]
        c = [jnp.zeros((Bt, H), jnp.float32) for _ in range(L)]

        # Statically-unrolled serial time loop (T is small for KG rollouts).
        for t in range(T):
            mask = t < lengths                               # (Bt, 1) bool, free VPU cmp
            # layer 0: input projection precomputed in the wrapper (static lane slice)
            x_gates = xproj_ref[:, t * G:(t + 1) * G]        # (Bt, 4H) f32
            gates = x_gates + jnp.dot(h[0].astype(jnp.bfloat16), w_hh[0],
                                      preferred_element_type=jnp.float32)
            h[0], c[0] = _lstm_cell(gates, h[0], c[0], mask, H)
            # layers 1 .. L-1: input = previous layer's hidden at this step
            for l in range(1, L):
                gates = (jnp.dot(h[l - 1].astype(jnp.bfloat16), w_ih[l - 1],
                                 preferred_element_type=jnp.float32)
                         + jnp.dot(h[l].astype(jnp.bfloat16), w_hh[l],
                                   preferred_element_type=jnp.float32)
                         + bias[l - 1])
                h[l], c[l] = _lstm_cell(gates, h[l], c[l], mask, H)

        # fused MLP head: E/Q contributions + b1 prefolded into head_bias.
        hid = jnp.dot(h[L - 1].astype(jnp.bfloat16), w1h_ref[...],
                      preferred_element_type=jnp.float32) + head_bias_ref[...]
        hid = jnp.maximum(hid, 0.0)                          # Dropout = identity (eval)
        out_ref[...] = (jnp.dot(hid.astype(jnp.bfloat16), w2_ref[...],
                                preferred_element_type=jnp.float32)
                        + b2_ref[...]).astype(out_ref.dtype)

    return kernel


# ----------------------------- pallas_call wrapper -----------------------------

def fused_forward_call(xproj_flat, lengths_b1, w_hh_ts, w_ih_ts, b_rows,
                       head_bias, w1h_t, w2_t, b2_row, *, seq_len, batch_tile):
    """One pallas_call: full masked stacked-LSTM time loop + MLP head, grid = batch tiles."""
    Bp, TG = xproj_flat.shape
    T = seq_len
    G = TG // T
    H = G // 4
    L = len(w_hh_ts)
    Dmlp = w1h_t.shape[1]
    Fp = w2_t.shape[1]
    num_tiles = Bp // batch_tile

    def resident(shape):
        nd = len(shape)
        return pl.BlockSpec(shape, lambda b, _nd=nd: (0,) * _nd)

    def per_tile(shape):                       # leading dim tiled over the batch grid
        nd = len(shape)
        return pl.BlockSpec(shape, lambda b, _nd=nd: (b,) + (0,) * (_nd - 1))

    in_specs = [per_tile((batch_tile, TG)),    # layer-0 projection, fully resident per tile
                per_tile((batch_tile, 1))]     # lengths (int32)
    in_specs += [resident((H, G))] * L         # W_hh^T (bf16)
    in_specs += [resident((H, G))] * (L - 1)   # W_ih^T layers >= 1 (bf16)
    in_specs += [resident((1, G))] * (L - 1)   # b_ih + b_hh layers >= 1 (f32)
    in_specs += [per_tile((batch_tile, Dmlp)), # head_bias = E@W1_E + Q@W1_Q + b1
                 resident((H, Dmlp)),          # W1_H^T (bf16)
                 resident((Dmlp, Fp)),         # W2^T (bf16, lane-padded)
                 resident((1, Fp))]            # b2 (lane-padded)
    inputs = ([xproj_flat, lengths_b1] + list(w_hh_ts) + list(w_ih_ts) + list(b_rows)
              + [head_bias, w1h_t, w2_t, b2_row])

    grid_spec = pltpu.PrefetchScalarGridSpec(
        num_scalar_prefetch=0,
        grid=(num_tiles,),
        in_specs=in_specs,
        out_specs=per_tile((batch_tile, Fp)),
    )
    return pl.pallas_call(
        _make_fused_kernel(L, T, H, batch_tile),
        out_shape=jax.ShapeDtypeStruct((Bp, Fp), jnp.float32),
        grid_spec=grid_spec,
        compiler_params=pltpu.CompilerParams(
            dimension_semantics=("parallel",)),   # batch tiles independent (v7x megacore)
    )(*inputs)


# ----------------------------- parameter init --------------------------------

def _xavier_uniform(key, shape):      # shape = (out, in), like torch weight
    fan_out, fan_in = shape
    lim = (6.0 / (fan_in + fan_out)) ** 0.5
    return jax.random.uniform(key, shape, jnp.float32, -lim, lim)


def _xavier_normal(key, shape):
    fan_out, fan_in = shape
    std = (2.0 / (fan_in + fan_out)) ** 0.5
    return std * jax.random.normal(key, shape, jnp.float32)


def init_params(key, *, input_dim, history_dim, state_dim, features_dim,
                history_num_layers):
    keys = jax.random.split(key, 4 + 2 * history_num_layers)
    p = {}
    # W1: Linear(state_dim -> input_dim), W2: Linear(input_dim -> features_dim)
    p["W1_w"] = _xavier_uniform(keys[0], (input_dim, state_dim))
    p["W1_b"] = jax.random.uniform(
        keys[1], (input_dim,), jnp.float32,
        -1.0 / state_dim ** 0.5, 1.0 / state_dim ** 0.5)
    p["W2_w"] = _xavier_uniform(keys[2], (features_dim, input_dim))
    p["W2_b"] = jax.random.uniform(
        keys[3], (features_dim,), jnp.float32,
        -1.0 / input_dim ** 0.5, 1.0 / input_dim ** 0.5)
    # LSTM (xavier_normal_ weights, zero biases — matches initialize_modules)
    for l in range(history_num_layers):
        d_in = input_dim if l == 0 else history_dim
        p[f"lstm_w_ih_{l}"] = _xavier_normal(keys[4 + 2 * l],
                                             (4 * history_dim, d_in))
        p[f"lstm_w_hh_{l}"] = _xavier_normal(keys[5 + 2 * l],
                                             (4 * history_dim, history_dim))
        p[f"lstm_b_ih_{l}"] = jnp.zeros((4 * history_dim,), jnp.float32)
        p[f"lstm_b_hh_{l}"] = jnp.zeros((4 * history_dim,), jnp.float32)
    return p


# ----------------------------- forward (glue + fused kernel) -------------------

def _reorder_gate_cols(w_t, H):
    """Permute the 4H gate axis from torch's (i,f,g,o) to kernel order (i,f,o,g)."""
    return jnp.concatenate(
        [w_t[..., :2 * H], w_t[..., 3 * H:4 * H], w_t[..., 2 * H:3 * H]], axis=-1)


def mlp_features_extractor_forward(params, rel_emb, ent_emb,
                                   query_relation, path_r, path_e, path_length,
                                   *, history_num_layers, relation_only=False,
                                   batch_tile=8):
    B, T = path_r.shape
    L = history_num_layers
    H = params["lstm_w_hh_0"].shape[1]
    G = 4 * H
    path_length = path_length.astype(jnp.int32)
    lengths = path_length + 1                                 # as in forward()

    # current_entity = gather(path_e, path_length)
    current_e = jnp.take_along_axis(path_e, path_length[:, None], axis=1)[:, 0]

    # action embedding = cat([relation_emb, entity_emb], -1)  -> (B, T, input_dim)
    path_embed = jnp.concatenate([rel_emb[path_r], ent_emb[path_e]],
                                 axis=-1).astype(jnp.float32)

    # Hoisted layer-0 input projection; batch-major output ('btg', no XLA transpose),
    # gate columns permuted to (i,f,o,g), then flattened to (B, T*4H) (free reshape).
    w_ih0_t = _reorder_gate_cols(params["lstm_w_ih_0"].T, H)          # (D_in, 4H)
    b0_row = _reorder_gate_cols(
        (params["lstm_b_ih_0"] + params["lstm_b_hh_0"])[None, :], H)  # (1, 4H)
    xproj = jnp.einsum("btd,dg->btg", path_embed, w_ih0_t) + b0_row   # (B, T, 4H)
    xproj = xproj.reshape(B, T * G)

    # Recurrent / upper-layer weights: gate-permuted, bf16 for the MXU.
    w_hh_ts = [_reorder_gate_cols(params[f"lstm_w_hh_{l}"].T, H).astype(jnp.bfloat16)
               for l in range(L)]
    w_ih_ts = [_reorder_gate_cols(params[f"lstm_w_ih_{l}"].T, H).astype(jnp.bfloat16)
               for l in range(1, L)]
    b_rows = [_reorder_gate_cols(
                  (params[f"lstm_b_ih_{l}"] + params[f"lstm_b_hh_{l}"])[None, :], H)
              for l in range(1, L)]

    # MLP head: split W1 over the state rows ([E | H | Q]) and prefold the
    # time-invariant E/Q contributions + b1 into head_bias (XLA side).
    Q = rel_emb[query_relation].astype(jnp.float32)           # (B, relation_dim)
    w1_t = params["W1_w"].T                                   # (state_dim, input_dim)
    if relation_only:
        w1_H = w1_t[:H]
        w1_Q = w1_t[H:]
        head_bias = Q @ w1_Q + params["W1_b"][None, :]
    else:
        E = ent_emb[current_e].astype(jnp.float32)            # (B, entity_dim)
        ent_dim = E.shape[-1]
        w1_E = w1_t[:ent_dim]
        w1_H = w1_t[ent_dim:ent_dim + H]
        w1_Q = w1_t[ent_dim + H:]
        head_bias = E @ w1_E + Q @ w1_Q + params["W1_b"][None, :]
    w1_H = w1_H.astype(jnp.bfloat16)

    # Pad features_dim to a multiple of 128 lanes (unmasked output vst).
    F = params["W2_w"].shape[0]
    Fp = -(-F // 128) * 128
    w2_t = jnp.pad(params["W2_w"].T, ((0, 0), (0, Fp - F))).astype(jnp.bfloat16)
    b2_row = jnp.pad(params["W2_b"], (0, Fp - F))[None, :]

    # Pad batch to a multiple of batch_tile (sublane density); padded rows have
    # length 0 -> frozen at h=0, and are sliced off below.
    Bp = -(-B // batch_tile) * batch_tile
    padb = Bp - B
    xproj_p = jnp.pad(xproj, ((0, padb), (0, 0)))
    lengths_p = jnp.pad(lengths, (0, padb))[:, None].astype(jnp.int32)
    head_bias_p = jnp.pad(head_bias, ((0, padb), (0, 0)))

    out = fused_forward_call(xproj_p, lengths_p, w_hh_ts, w_ih_ts, b_rows,
                             head_bias_p, w1_H, w2_t, b2_row,
                             seq_len=T, batch_tile=batch_tile)
    return out[:B, :F]


# ----------------------------- main -------------------------------------------

if __name__ == "__main__":
    # Small deterministic configuration
    B = 4                    # batch
    num_rollout_steps = 3
    T = num_rollout_steps + 1    # path buffer length
    num_relations, num_entities = 8, 16
    relation_dim, entity_dim = 16, 16
    input_dim = relation_dim + entity_dim        # 32 (action embedding)
    history_dim = 32
    history_num_layers = 2
    relation_only = False
    state_dim = entity_dim + history_dim + relation_dim      # 64
    features_dim = 32

    key = jax.random.PRNGKey(0)
    k_par, k_rel, k_ent, k_q, k_pr, k_pe, k_len = jax.random.split(key, 7)

    params = init_params(k_par, input_dim=input_dim, history_dim=history_dim,
                         state_dim=state_dim, features_dim=features_dim,
                         history_num_layers=history_num_layers)

    # "kg" embedding tables
    rel_emb = 0.1 * jax.random.normal(k_rel, (num_relations, relation_dim),
                                      jnp.float32)
    ent_emb = 0.1 * jax.random.normal(k_ent, (num_entities, entity_dim),
                                      jnp.float32)

    # Observation fields
    query_relation = jax.random.randint(k_q, (B,), 0, num_relations)
    path_r = jax.random.randint(k_pr, (B, T), 0, num_relations)
    path_e = jax.random.randint(k_pe, (B, T), 0, num_entities)
    path_length = jax.random.randint(k_len, (B,), 0, T - 1)   # in [0, T-2]

    out = mlp_features_extractor_forward(
        params, rel_emb, ent_emb,
        query_relation, path_r, path_e, path_length,
        history_num_layers=history_num_layers, relation_only=relation_only)
    out = jax.block_until_ready(out)
    assert out.shape == (B, features_dim) and out.dtype == jnp.float32
    print("KERNEL_OK")
</pallas_src>

<mosaic_0001>
module attributes {stable_mosaic.version = 11 : i64} {
  func.func @kernel(%arg0: i32, %arg1: memref<8x512xf32, #tpu.memory_space<vmem>>, %arg2: memref<8x1xi32, #tpu.memory_space<vmem>>, %arg3: memref<32x128xbf16, #tpu.memory_space<vmem>>, %arg4: memref<32x128xbf16, #tpu.memory_space<vmem>>, %arg5: memref<32x128xbf16, #tpu.memory_space<vmem>>, %arg6: memref<1x128xf32, #tpu.memory_space<vmem>>, %arg7: memref<8x32xf32, #tpu.memory_space<vmem>>, %arg8: memref<32x32xbf16, #tpu.memory_space<vmem>>, %arg9: memref<32x128xbf16, #tpu.memory_space<vmem>>, %arg10: memref<1x128xf32, #tpu.memory_space<vmem>>, %arg11: memref<8x128xf32, #tpu.memory_space<vmem>>) attributes {dimension_semantics = [#tpu.dimension_semantics<parallel>], iteration_bounds = array<i64: 1>, scalar_prefetch = 0 : i64, scratch_operands = 0 : i64, tpu.core_type = #tpu.core_type<tc>, window_params = [{transform_indices = @transform_0, window_bounds = array<i64: 8, 512>}, {transform_indices = @transform_1, window_bounds = array<i64: 8, 1>}, {pipeline_mode = #tpu.pipeline_mode<synchronous>, transform_indices = @transform_2, window_bounds = array<i64: 32, 128>}, {pipeline_mode = #tpu.pipeline_mode<synchronous>, transform_indices = @transform_3, window_bounds = array<i64: 32, 128>}, {pipeline_mode = #tpu.pipeline_mode<synchronous>, transform_indices = @transform_4, window_bounds = array<i64: 32, 128>}, {pipeline_mode = #tpu.pipeline_mode<synchronous>, transform_indices = @transform_5, window_bounds = array<i64: 1, 128>}, {transform_indices = @transform_6, window_bounds = array<i64: 8, 32>}, {pipeline_mode = #tpu.pipeline_mode<synchronous>, transform_indices = @transform_7, window_bounds = array<i64: 32, 32>}, {pipeline_mode = #tpu.pipeline_mode<synchronous>, transform_indices = @transform_8, window_bounds = array<i64: 32, 128>}, {pipeline_mode = #tpu.pipeline_mode<synchronous>, transform_indices = @transform_9, window_bounds = array<i64: 1, 128>}, {transform_indices = @transform_10, window_bounds = array<i64: 8, 128>}]} {
    %c0 = arith.constant 0 : index
    %c0_0 = arith.constant 0 : index
    %0 = vector.load %arg2[%c0, %c0_0] : memref<8x1xi32, #tpu.memory_space<vmem>>, vector<8x1xi32>
    %c0_1 = arith.constant 0 : index
    %c0_2 = arith.constant 0 : index
    %1 = vector.load %arg3[%c0_1, %c0_2] : memref<32x128xbf16, #tpu.memory_space<vmem>>, vector<32x128xbf16>
    %c0_3 = arith.constant 0 : index
    %c0_4 = arith.constant 0 : index
    %2 = vector.load %arg4[%c0_3, %c0_4] : memref<32x128xbf16, #tpu.memory_space<vmem>>, vector<32x128xbf16>
    %c0_5 = arith.constant 0 : index
    %c0_6 = arith.constant 0 : index
    %3 = vector.load %arg5[%c0_5, %c0_6] : memref<32x128xbf16, #tpu.memory_space<vmem>>, vector<32x128xbf16>
    %c0_7 = arith.constant 0 : index
    %c0_8 = arith.constant 0 : index
    %4 = vector.load %arg6[%c0_7, %c0_8] : memref<1x128xf32, #tpu.memory_space<vmem>>, vector<1x128xf32>
    %cst = arith.constant 0.000000e+00 : f32
    %5 = vector.broadcast %cst : f32 to vector<8x32xf32>
    %cst_9 = arith.constant 0.000000e+00 : f32
    %6 = vector.broadcast %cst_9 : f32 to vector<8x32xf32>
    %cst_10 = arith.constant 0.000000e+00 : f32
    %7 = vector.broadcast %cst_10 : f32 to vector<8x32xf32>
    %cst_11 = arith.constant 0.000000e+00 : f32
    %8 = vector.broadcast %cst_11 : f32 to vector<8x32xf32>
    %c0_i32 = arith.constant 0 : i32
    %9 = vector.broadcast %c0_i32 : i32 to vector<8x1xi32>
    %10 = arith.cmpi sgt, %0, %9 : vector<8x1xi32>
    %c0_12 = arith.constant 0 : index
    %c0_13 = arith.constant 0 : index
    %11 = vector.load %arg1[%c0_12, %c0_13] : memref<8x512xf32, #tpu.memory_space<vmem>>, vector<8x128xf32>
    %12 = arith.truncf %5 : vector<8x32xf32> to vector<8x32xbf16>
    %cst_14 = arith.constant dense<0.000000e+00> : vector<8x128xf32>
    %13 = tpu.matmul %12, %1, %cst_14 {dimension_numbers = #tpu.dot_dimension_numbers<[1], [0], [0], [1], [0, 0, 1, 1], [], []>} : vector<8x32xbf16>, vector<32x128xbf16>, vector<8x128xf32> -> vector<8x128xf32>
    %14 = arith.addf %11, %13 : vector<8x128xf32>
    %15 = vector.extract_strided_slice %14 {offsets = [0, 0], sizes = [8, 96], strides = [1, 1]} : vector<8x128xf32> to vector<8x96xf32>
    %16 = arith.negf %15 : vector<8x96xf32>
    %17 = math.exp %16 : vector<8x96xf32>
    %cst_15 = arith.constant 1.000000e+00 : f32
    %18 = vector.broadcast %cst_15 : f32 to vector<8x96xf32>
    %19 = arith.addf %18, %17 : vector<8x96xf32>
    %20 = arith.divf %18, %19 : vector<8x96xf32>
    %21 = vector.extract_strided_slice %14 {offsets = [0, 96], sizes = [8, 32], strides = [1, 1]} : vector<8x128xf32> to vector<8x32xf32>
    %22 = math.tanh %21 : vector<8x32xf32>
    %23 = vector.extract_strided_slice %20 {offsets = [0, 0], sizes = [8, 32], strides = [1, 1]} : vector<8x96xf32> to vector<8x32xf32>
    %24 = vector.extract_strided_slice %20 {offsets = [0, 32], sizes = [8, 32], strides = [1, 1]} : vector<8x96xf32> to vector<8x32xf32>
    %25 = vector.extract_strided_slice %20 {offsets = [0, 64], sizes = [8, 32], strides = [1, 1]} : vector<8x96xf32> to vector<8x32xf32>
    %26 = arith.mulf %24, %7 : vector<8x32xf32>
    %27 = arith.mulf %23, %22 : vector<8x32xf32>
    %28 = arith.addf %26, %27 : vector<8x32xf32>
    %29 = math.tanh %28 : vector<8x32xf32>
    %30 = arith.mulf %25, %29 : vector<8x32xf32>
    %31 = vector.shape_cast %10 : vector<8x1xi1> to vector<8x1xi1>
    %32 = vector.broadcast %31 : vector<8x1xi1> to vector<8x32xi1>
    %33 = arith.select %32, %30, %5 : vector<8x32xi1>, vector<8x32xf32>
    %34 = vector.shape_cast %10 : vector<8x1xi1> to vector<8x1xi1>
    %35 = vector.broadcast %34 : vector<8x1xi1> to vector<8x32xi1>
    %36 = arith.select %35, %28, %7 : vector<8x32xi1>, vector<8x32xf32>
    %37 = arith.truncf %33 : vector<8x32xf32> to vector<8x32xbf16>
    %cst_16 = arith.constant dense<0.000000e+00> : vector<8x128xf32>
    %38 = tpu.matmul %37, %3, %cst_16 {dimension_numbers = #tpu.dot_dimension_numbers<[1], [0], [0], [1], [0, 0, 1, 1], [], []>} : vector<8x32xbf16>, vector<32x128xbf16>, vector<8x128xf32> -> vector<8x128xf32>
    %39 = arith.truncf %6 : vector<8x32xf32> to vector<8x32xbf16>
    %cst_17 = arith.constant dense<0.000000e+00> : vector<8x128xf32>
    %40 = tpu.matmul %39, %2, %cst_17 {dimension_numbers = #tpu.dot_dimension_numbers<[1], [0], [0], [1], [0, 0, 1, 1], [], []>} : vector<8x32xbf16>, vector<32x128xbf16>, vector<8x128xf32> -> vector<8x128xf32>
    %41 = arith.addf %38, %40 : vector<8x128xf32>
    %42 = vector.broadcast %4 : vector<1x128xf32> to vector<8x128xf32>
    %43 = arith.addf %41, %42 : vector<8x128xf32>
    %44 = vector.extract_strided_slice %43 {offsets = [0, 0], sizes = [8, 96], strides = [1, 1]} : vector<8x128xf32> to vector<8x96xf32>
    %45 = arith.negf %44 : vector<8x96xf32>
    %46 = math.exp %45 : vector<8x96xf32>
    %cst_18 = arith.constant 1.000000e+00 : f32
    %47 = vector.broadcast %cst_18 : f32 to vector<8x96xf32>
    %48 = arith.addf %47, %46 : vector<8x96xf32>
    %49 = arith.divf %47, %48 : vector<8x96xf32>
    %50 = vector.extract_strided_slice %43 {offsets = [0, 96], sizes = [8, 32], strides = [1, 1]} : vector<8x128xf32> to vector<8x32xf32>
    %51 = math.tanh %50 : vector<8x32xf32>
    %52 = vector.extract_strided_slice %49 {offsets = [0, 0], sizes = [8, 32], strides = [1, 1]} : vector<8x96xf32> to vector<8x32xf32>
    %53 = vector.extract_strided_slice %49 {offsets = [0, 32], sizes = [8, 32], strides = [1, 1]} : vector<8x96xf32> to vector<8x32xf32>
    %54 = vector.extract_strided_slice %49 {offsets = [0, 64], sizes = [8, 32], strides = [1, 1]} : vector<8x96xf32> to vector<8x32xf32>
    %55 = arith.mulf %53, %8 : vector<8x32xf32>
    %56 = arith.mulf %52, %51 : vector<8x32xf32>
    %57 = arith.addf %55, %56 : vector<8x32xf32>
    %58 = math.tanh %57 : vector<8x32xf32>
    %59 = arith.mulf %54, %58 : vector<8x32xf32>
    %60 = vector.shape_cast %10 : vector<8x1xi1> to vector<8x1xi1>
    %61 = vector.broadcast %60 : vector<8x1xi1> to vector<8x32xi1>
    %62 = arith.select %61, %59, %6 : vector<8x32xi1>, vector<8x32xf32>
    %63 = vector.shape_cast %10 : vector<8x1xi1> to vector<8x1xi1>
    %64 = vector.broadcast %63 : vector<8x1xi1> to vector<8x32xi1>
    %65 = arith.select %64, %57, %8 : vector<8x32xi1>, vector<8x32xf32>
    %c1_i32 = arith.constant 1 : i32
    %66 = vector.broadcast %c1_i32 : i32 to vector<8x1xi32>
    %67 = arith.cmpi sgt, %0, %66 : vector<8x1xi32>
    %c0_19 = arith.constant 0 : index
    %c128 = arith.constant 128 : index
    %68 = vector.load %arg1[%c0_19, %c128] : memref<8x512xf32, #tpu.memory_space<vmem>>, vector<8x128xf32>
    %69 = arith.truncf %33 : vector<8x32xf32> to vector<8x32xbf16>
    %cst_20 = arith.constant dense<0.000000e+00> : vector<8x128xf32>
    %70 = tpu.matmul %69, %1, %cst_20 {dimension_numbers = #tpu.dot_dimension_numbers<[1], [0], [0], [1], [0, 0, 1, 1], [], []>} : vector<8x32xbf16>, vector<32x128xbf16>, vector<8x128xf32> -> vector<8x128xf32>
    %71 = arith.addf %68, %70 : vector<8x128xf32>
    %72 = vector.extract_strided_slice %71 {offsets = [0, 0], sizes = [8, 96], strides = [1, 1]} : vector<8x128xf32> to vector<8x96xf32>
    %73 = arith.negf %72 : vector<8x96xf32>
    %74 = math.exp %73 : vector<8x96xf32>
    %cst_21 = arith.constant 1.000000e+00 : f32
    %75 = vector.broadcast %cst_21 : f32 to vector<8x96xf32>
    %76 = arith.addf %75, %74 : vector<8x96xf32>
    %77 = arith.divf %75, %76 : vector<8x96xf32>
    %78 = vector.extract_strided_slice %71 {offsets = [0, 96], sizes = [8, 32], strides = [1, 1]} : vector<8x128xf32> to vector<8x32xf32>
    %79 = math.tanh %78 : vector<8x32xf32>
    %80 = vector.extract_strided_slice %77 {offsets = [0, 0], sizes = [8, 32], strides = [1, 1]} : vector<8x96xf32> to vector<8x32xf32>
    %81 = vector.extract_strided_slice %77 {offsets = [0, 32], sizes = [8, 32], strides = [1, 1]} : vector<8x96xf32> to vector<8x32xf32>
    %82 = vector.extract_strided_slice %77 {offsets = [0, 64], sizes = [8, 32], strides = [1, 1]} : vector<8x96xf32> to vector<8x32xf32>
    %83 = arith.mulf %81, %36 : vector<8x32xf32>
    %84 = arith.mulf %80, %79 : vector<8x32xf32>
    %85 = arith.addf %83, %84 : vector<8x32xf32>
    %86 = math.tanh %85 : vector<8x32xf32>
    %87 = arith.mulf %82, %86 : vector<8x32xf32>
    %88 = vector.shape_cast %67 : vector<8x1xi1> to vector<8x1xi1>
    %89 = vector.broadcast %88 : vector<8x1xi1> to vector<8x32xi1>
    %90 = arith.select %89, %87, %33 : vector<8x32xi1>, vector<8x32xf32>
    %91 = vector.shape_cast %67 : vector<8x1xi1> to vector<8x1xi1>
    %92 = vector.broadcast %91 : vector<8x1xi1> to vector<8x32xi1>
    %93 = arith.select %92, %85, %36 : vector<8x32xi1>, vector<8x32xf32>
    %94 = arith.truncf %90 : vector<8x32xf32> to vector<8x32xbf16>
    %cst_22 = arith.constant dense<0.000000e+00> : vector<8x128xf32>
    %95 = tpu.matmul %94, %3, %cst_22 {dimension_numbers = #tpu.dot_dimension_numbers<[1], [0], [0], [1], [0, 0, 1, 1], [], []>} : vector<8x32xbf16>, vector<32x128xbf16>, vector<8x128xf32> -> vector<8x128xf32>
    %96 = arith.truncf %62 : vector<8x32xf32> to vector<8x32xbf16>
    %cst_23 = arith.constant dense<0.000000e+00> : vector<8x128xf32>
    %97 = tpu.matmul %96, %2, %cst_23 {dimension_numbers = #tpu.dot_dimension_numbers<[1], [0], [0], [1], [0, 0, 1, 1], [], []>} : vector<8x32xbf16>, vector<32x128xbf16>, vector<8x128xf32> -> vector<8x128xf32>
    %98 = arith.addf %95, %97 : vector<8x128xf32>
    %99 = vector.broadcast %4 : vector<1x128xf32> to vector<8x128xf32>
    %100 = arith.addf %98, %99 : vector<8x128xf32>
    %101 = vector.extract_strided_slice %100 {offsets = [0, 0], sizes = [8, 96], strides = [1, 1]} : vector<8x128xf32> to vector<8x96xf32>
    %102 = arith.negf %101 : vector<8x96xf32>
    %103 = math.exp %102 : vector<8x96xf32>
    %cst_24 = arith.constant 1.000000e+00 : f32
    %104 = vector.broadcast %cst_24 : f32 to vector<8x96xf32>
    %105 = arith.addf %104, %103 : vector<8x96xf32>
    %106 = arith.divf %104, %105 : vector<8x96xf32>
    %107 = vector.extract_strided_slice %100 {offsets = [0, 96], sizes = [8, 32], strides = [1, 1]} : vector<8x128xf32> to vector<8x32xf32>
    %108 = math.tanh %107 : vector<8x32xf32>
    %109 = vector.extract_strided_slice %106 {offsets = [0, 0], sizes = [8, 32], strides = [1, 1]} : vector<8x96xf32> to vector<8x32xf32>
    %110 = vector.extract_strided_slice %106 {offsets = [0, 32], sizes = [8, 32], strides = [1, 1]} : vector<8x96xf32> to vector<8x32xf32>
    %111 = vector.extract_strided_slice %106 {offsets = [0, 64], sizes = [8, 32], strides = [1, 1]} : vector<8x96xf32> to vector<8x32xf32>
    %112 = arith.mulf %110, %65 : vector<8x32xf32>
    %113 = arith.mulf %109, %108 : vector<8x32xf32>
    %114 = arith.addf %112, %113 : vector<8x32xf32>
    %115 = math.tanh %114 : vector<8x32xf32>
    %116 = arith.mulf %111, %115 : vector<8x32xf32>
    %117 = vector.shape_cast %67 : vector<8x1xi1> to vector<8x1xi1>
    %118 = vector.broadcast %117 : vector<8x1xi1> to vector<8x32xi1>
    %119 = arith.select %118, %116, %62 : vector<8x32xi1>, vector<8x32xf32>
    %120 = vector.shape_cast %67 : vector<8x1xi1> to vector<8x1xi1>
    %121 = vector.broadcast %120 : vector<8x1xi1> to vector<8x32xi1>
    %122 = arith.select %121, %114, %65 : vector<8x32xi1>, vector<8x32xf32>
    %c2_i32 = arith.constant 2 : i32
    %123 = vector.broadcast %c2_i32 : i32 to vector<8x1xi32>
    %124 = arith.cmpi sgt, %0, %123 : vector<8x1xi32>
    %c0_25 = arith.constant 0 : index
    %c256 = arith.constant 256 : index
    %125 = vector.load %arg1[%c0_25, %c256] : memref<8x512xf32, #tpu.memory_space<vmem>>, vector<8x128xf32>
    %126 = arith.truncf %90 : vector<8x32xf32> to vector<8x32xbf16>
    %cst_26 = arith.constant dense<0.000000e+00> : vector<8x128xf32>
    %127 = tpu.matmul %126, %1, %cst_26 {dimension_numbers = #tpu.dot_dimension_numbers<[1], [0], [0], [1], [0, 0, 1, 1], [], []>} : vector<8x32xbf16>, vector<32x128xbf16>, vector<8x128xf32> -> vector<8x128xf32>
    %128 = arith.addf %125, %127 : vector<8x128xf32>
    %129 = vector.extract_strided_slice %128 {offsets = [0, 0], sizes = [8, 96], strides = [1, 1]} : vector<8x128xf32> to vector<8x96xf32>
    %130 = arith.negf %129 : vector<8x96xf32>
    %131 = math.exp %130 : vector<8x96xf32>
    %cst_27 = arith.constant 1.000000e+00 : f32
    %132 = vector.broadcast %cst_27 : f32 to vector<8x96xf32>
    %133 = arith.addf %132, %131 : vector<8x96xf32>
    %134 = arith.divf %132, %133 : vector<8x96xf32>
    %135 = vector.extract_strided_slice %128 {offsets = [0, 96], sizes = [8, 32], strides = [1, 1]} : vector<8x128xf32> to vector<8x32xf32>
    %136 = math.tanh %135 : vector<8x32xf32>
    %137 = vector.extract_strided_slice %134 {offsets = [0, 0], sizes = [8, 32], strides = [1, 1]} : vector<8x96xf32> to vector<8x32xf32>
    %138 = vector.extract_strided_slice %134 {offsets = [0, 32], sizes = [8, 32], strides = [1, 1]} : vector<8x96xf32> to vector<8x32xf32>
    %139 = vector.extract_strided_slice %134 {offsets = [0, 64], sizes = [8, 32], strides = [1, 1]} : vector<8x96xf32> to vector<8x32xf32>
    %140 = arith.mulf %138, %93 : vector<8x32xf32>
    %141 = arith.mulf %137, %136 : vector<8x32xf32>
    %142 = arith.addf %140, %141 : vector<8x32xf32>
    %143 = math.tanh %142 : vector<8x32xf32>
    %144 = arith.mulf %139, %143 : vector<8x32xf32>
    %145 = vector.shape_cast %124 : vector<8x1xi1> to vector<8x1xi1>
    %146 = vector.broadcast %145 : vector<8x1xi1> to vector<8x32xi1>
    %147 = arith.select %146, %144, %90 : vector<8x32xi1>, vector<8x32xf32>
    %148 = vector.shape_cast %124 : vector<8x1xi1> to vector<8x1xi1>
    %149 = vector.broadcast %148 : vector<8x1xi1> to vector<8x32xi1>
    %150 = arith.select %149, %142, %93 : vector<8x32xi1>, vector<8x32xf32>
    %151 = arith.truncf %147 : vector<8x32xf32> to vector<8x32xbf16>
    %cst_28 = arith.constant dense<0.000000e+00> : vector<8x128xf32>
    %152 = tpu.matmul %151, %3, %cst_28 {dimension_numbers = #tpu.dot_dimension_numbers<[1], [0], [0], [1], [0, 0, 1, 1], [], []>} : vector<8x32xbf16>, vector<32x128xbf16>, vector<8x128xf32> -> vector<8x128xf32>
    %153 = arith.truncf %119 : vector<8x32xf32> to vector<8x32xbf16>
    %cst_29 = arith.constant dense<0.000000e+00> : vector<8x128xf32>
    %154 = tpu.matmul %153, %2, %cst_29 {dimension_numbers = #tpu.dot_dimension_numbers<[1], [0], [0], [1], [0, 0, 1, 1], [], []>} : vector<8x32xbf16>, vector<32x128xbf16>, vector<8x128xf32> -> vector<8x128xf32>
    %155 = arith.addf %152, %154 : vector<8x128xf32>
    %156 = vector.broadcast %4 : vector<1x128xf32> to vector<8x128xf32>
    %157 = arith.addf %155, %156 : vector<8x128xf32>
    %158 = vector.extract_strided_slice %157 {offsets = [0, 0], sizes = [8, 96], strides = [1, 1]} : vector<8x128xf32> to vector<8x96xf32>
    %159 = arith.negf %158 : vector<8x96xf32>
    %160 = math.exp %159 : vector<8x96xf32>
    %cst_30 = arith.constant 1.000000e+00 : f32
    %161 = vector.broadcast %cst_30 : f32 to vector<8x96xf32>
    %162 = arith.addf %161, %160 : vector<8x96xf32>
    %163 = arith.divf %161, %162 : vector<8x96xf32>
    %164 = vector.extract_strided_slice %157 {offsets = [0, 96], sizes = [8, 32], strides = [1, 1]} : vector<8x128xf32> to vector<8x32xf32>
    %165 = math.tanh %164 : vector<8x32xf32>
    %166 = vector.extract_strided_slice %163 {offsets = [0, 0], sizes = [8, 32], strides = [1, 1]} : vector<8x96xf32> to vector<8x32xf32>
    %167 = vector.extract_strided_slice %163 {offsets = [0, 32], sizes = [8, 32], strides = [1, 1]} : vector<8x96xf32> to vector<8x32xf32>
    %168 = vector.extract_strided_slice %163 {offsets = [0, 64], sizes = [8, 32], strides = [1, 1]} : vector<8x96xf32> to vector<8x32xf32>
    %169 = arith.mulf %167, %122 : vector<8x32xf32>
    %170 = arith.mulf %166, %165 : vector<8x32xf32>
    %171 = arith.addf %169, %170 : vector<8x32xf32>
    %172 = math.tanh %171 : vector<8x32xf32>
    %173 = arith.mulf %168, %172 : vector<8x32xf32>
    %174 = vector.shape_cast %124 : vector<8x1xi1> to vector<8x1xi1>
    %175 = vector.broadcast %174 : vector<8x1xi1> to vector<8x32xi1>
    %176 = arith.select %175, %173, %119 : vector<8x32xi1>, vector<8x32xf32>
    %177 = vector.shape_cast %124 : vector<8x1xi1> to vector<8x1xi1>
    %178 = vector.broadcast %177 : vector<8x1xi1> to vector<8x32xi1>
    %179 = arith.select %178, %171, %122 : vector<8x32xi1>, vector<8x32xf32>
    %c3_i32 = arith.constant 3 : i32
    %180 = vector.broadcast %c3_i32 : i32 to vector<8x1xi32>
    %181 = arith.cmpi sgt, %0, %180 : vector<8x1xi32>
    %c0_31 = arith.constant 0 : index
    %c384 = arith.constant 384 : index
    %182 = vector.load %arg1[%c0_31, %c384] : memref<8x512xf32, #tpu.memory_space<vmem>>, vector<8x128xf32>
    %183 = arith.truncf %147 : vector<8x32xf32> to vector<8x32xbf16>
    %cst_32 = arith.constant dense<0.000000e+00> : vector<8x128xf32>
    %184 = tpu.matmul %183, %1, %cst_32 {dimension_numbers = #tpu.dot_dimension_numbers<[1], [0], [0], [1], [0, 0, 1, 1], [], []>} : vector<8x32xbf16>, vector<32x128xbf16>, vector<8x128xf32> -> vector<8x128xf32>
    %185 = arith.addf %182, %184 : vector<8x128xf32>
    %186 = vector.extract_strided_slice %185 {offsets = [0, 0], sizes = [8, 96], strides = [1, 1]} : vector<8x128xf32> to vector<8x96xf32>
    %187 = arith.negf %186 : vector<8x96xf32>
    %188 = math.exp %187 : vector<8x96xf32>
    %cst_33 = arith.constant 1.000000e+00 : f32
    %189 = vector.broadcast %cst_33 : f32 to vector<8x96xf32>
    %190 = arith.addf %189, %188 : vector<8x96xf32>
    %191 = arith.divf %189, %190 : vector<8x96xf32>
    %192 = vector.extract_strided_slice %185 {offsets = [0, 96], sizes = [8, 32], strides = [1, 1]} : vector<8x128xf32> to vector<8x32xf32>
    %193 = math.tanh %192 : vector<8x32xf32>
    %194 = vector.extract_strided_slice %191 {offsets = [0, 0], sizes = [8, 32], strides = [1, 1]} : vector<8x96xf32> to vector<8x32xf32>
    %195 = vector.extract_strided_slice %191 {offsets = [0, 32], sizes = [8, 32], strides = [1, 1]} : vector<8x96xf32> to vector<8x32xf32>
    %196 = vector.extract_strided_slice %191 {offsets = [0, 64], sizes = [8, 32], strides = [1, 1]} : vector<8x96xf32> to vector<8x32xf32>
    %197 = arith.mulf %195, %150 : vector<8x32xf32>
    %198 = arith.mulf %194, %193 : vector<8x32xf32>
    %199 = arith.addf %197, %198 : vector<8x32xf32>
    %200 = math.tanh %199 : vector<8x32xf32>
    %201 = arith.mulf %196, %200 : vector<8x32xf32>
    %202 = vector.shape_cast %181 : vector<8x1xi1> to vector<8x1xi1>
    %203 = vector.broadcast %202 : vector<8x1xi1> to vector<8x32xi1>
    %204 = arith.select %203, %201, %147 : vector<8x32xi1>, vector<8x32xf32>
    %205 = arith.truncf %204 : vector<8x32xf32> to vector<8x32xbf16>
    %cst_34 = arith.constant dense<0.000000e+00> : vector<8x128xf32>
    %206 = tpu.matmul %205, %3, %cst_34 {dimension_numbers = #tpu.dot_dimension_numbers<[1], [0], [0], [1], [0, 0, 1, 1], [], []>} : vector<8x32xbf16>, vector<32x128xbf16>, vector<8x128xf32> -> vector<8x128xf32>
    %207 = arith.truncf %176 : vector<8x32xf32> to vector<8x32xbf16>
    %cst_35 = arith.constant dense<0.000000e+00> : vector<8x128xf32>
    %208 = tpu.matmul %207, %2, %cst_35 {dimension_numbers = #tpu.dot_dimension_numbers<[1], [0], [0], [1], [0, 0, 1, 1], [], []>} : vector<8x32xbf16>, vector<32x128xbf16>, vector<8x128xf32> -> vector<8x128xf32>
    %209 = arith.addf %206, %208 : vector<8x128xf32>
    %210 = vector.broadcast %4 : vector<1x128xf32> to vector<8x128xf32>
    %211 = arith.addf %209, %210 : vector<8x128xf32>
    %212 = vector.extract_strided_slice %211 {offsets = [0, 0], sizes = [8, 96], strides = [1, 1]} : vector<8x128xf32> to vector<8x96xf32>
    %213 = arith.negf %212 : vector<8x96xf32>
    %214 = math.exp %213 : vector<8x96xf32>
    %cst_36 = arith.constant 1.000000e+00 : f32
    %215 = vector.broadcast %cst_36 : f32 to vector<8x96xf32>
    %216 = arith.addf %215, %214 : vector<8x96xf32>
    %217 = arith.divf %215, %216 : vector<8x96xf32>
    %218 = vector.extract_strided_slice %211 {offsets = [0, 96], sizes = [8, 32], strides = [1, 1]} : vector<8x128xf32> to vector<8x32xf32>
    %219 = math.tanh %218 : vector<8x32xf32>
    %220 = vector.extract_strided_slice %217 {offsets = [0, 0], sizes = [8, 32], strides = [1, 1]} : vector<8x96xf32> to vector<8x32xf32>
    %221 = vector.extract_strided_slice %217 {offsets = [0, 32], sizes = [8, 32], strides = [1, 1]} : vector<8x96xf32> to vector<8x32xf32>
    %222 = vector.extract_strided_slice %217 {offsets = [0, 64], sizes = [8, 32], strides = [1, 1]} : vector<8x96xf32> to vector<8x32xf32>
    %223 = arith.mulf %221, %179 : vector<8x32xf32>
    %224 = arith.mulf %220, %219 : vector<8x32xf32>
    %225 = arith.addf %223, %224 : vector<8x32xf32>
    %226 = math.tanh %225 : vector<8x32xf32>
    %227 = arith.mulf %222, %226 : vector<8x32xf32>
    %228 = vector.shape_cast %181 : vector<8x1xi1> to vector<8x1xi1>
    %229 = vector.broadcast %228 : vector<8x1xi1> to vector<8x32xi1>
    %230 = arith.select %229, %227, %176 : vector<8x32xi1>, vector<8x32xf32>
    %231 = arith.truncf %230 : vector<8x32xf32> to vector<8x32xbf16>
    %c0_37 = arith.constant 0 : index
    %c0_38 = arith.constant 0 : index
    %232 = vector.load %arg8[%c0_37, %c0_38] : memref<32x32xbf16, #tpu.memory_space<vmem>>, vector<32x32xbf16>
    %cst_39 = arith.constant dense<0.000000e+00> : vector<8x32xf32>
    %233 = tpu.matmul %231, %232, %cst_39 {dimension_numbers = #tpu.dot_dimension_numbers<[1], [0], [0], [1], [0, 0, 1, 1], [], []>} : vector<8x32xbf16>, vector<32x32xbf16>, vector<8x32xf32> -> vector<8x32xf32>
    %c0_40 = arith.constant 0 : index
    %c0_41 = arith.constant 0 : index
    %234 = vector.load %arg7[%c0_40, %c0_41] : memref<8x32xf32, #tpu.memory_space<vmem>>, vector<8x32xf32>
    %235 = arith.addf %233, %234 : vector<8x32xf32>
    %cst_42 = arith.constant 0.000000e+00 : f32
    %236 = vector.broadcast %cst_42 : f32 to vector<8x32xf32>
    %237 = arith.maximumf %235, %236 : vector<8x32xf32>
    %238 = arith.truncf %237 : vector<8x32xf32> to vector<8x32xbf16>
    %c0_43 = arith.constant 0 : index
    %c0_44 = arith.constant 0 : index
    %239 = vector.load %arg9[%c0_43, %c0_44] : memref<32x128xbf16, #tpu.memory_space<vmem>>, vector<32x128xbf16>
    %cst_45 = arith.constant dense<0.000000e+00> : vector<8x128xf32>
    %240 = tpu.matmul %238, %239, %cst_45 {dimension_numbers = #tpu.dot_dimension_numbers<[1], [0], [0], [1], [0, 0, 1, 1], [], []>} : vector<8x32xbf16>, vector<32x128xbf16>, vector<8x128xf32> -> vector<8x128xf32>
    %c0_46 = arith.constant 0 : index
    %c0_47 = arith.constant 0 : index
    %241 = vector.load %arg10[%c0_46, %c0_47] : memref<1x128xf32, #tpu.memory_space<vmem>>, vector<1x128xf32>
    %242 = vector.broadcast %241 : vector<1x128xf32> to vector<8x128xf32>
    %243 = arith.addf %240, %242 : vector<8x128xf32>
    %c0_48 = arith.constant 0 : index
    %c0_49 = arith.constant 0 : index
    %244 = vector.load %arg11[%c0_48, %c0_49] : memref<8x128xf32, #tpu.memory_space<vmem>>, vector<8x128xf32>
    tpu.vector_store %arg11[%c0_48, %c0_49], %243 {strides = array<i32>} : memref<8x128xf32, #tpu.memory_space<vmem>>, vector<8x128xf32>,
    return
  }
  func.func @transform_0(%arg0: i32) -> (i32, i32) {
    %c0_i32 = arith.constant 0 : i32
    %c0_i32_0 = arith.constant 0 : i32
    return %arg0, %c0_i32 : i32, i32
  }
  func.func @transform_1(%arg0: i32) -> (i32, i32) {
    %c0_i32 = arith.constant 0 : i32
    %c0_i32_0 = arith.constant 0 : i32
    return %arg0, %c0_i32 : i32, i32
  }
  func.func @transform_2(%arg0: i32) -> (i32, i32) {
    %c0_i32 = arith.constant 0 : i32
    %c0_i32_0 = arith.constant 0 : i32
    %c0_i32_1 = arith.constant 0 : i32
    return %c0_i32, %c0_i32_0 : i32, i32
  }
  func.func @transform_3(%arg0: i32) -> (i32, i32) {
    %c0_i32 = arith.constant 0 : i32
    %c0_i32_0 = arith.constant 0 : i32
    %c0_i32_1 = arith.constant 0 : i32
    return %c0_i32, %c0_i32_0 : i32, i32
  }
  func.func @transform_4(%arg0: i32) -> (i32, i32) {
    %c0_i32 = arith.constant 0 : i32
    %c0_i32_0 = arith.constant 0 : i32
    %c0_i32_1 = arith.constant 0 : i32
    return %c0_i32, %c0_i32_0 : i32, i32
  }
  func.func @transform_5(%arg0: i32) -> (i32, i32) {
    %c0_i32 = arith.constant 0 : i32
    %c0_i32_0 = arith.constant 0 : i32
    %c0_i32_1 = arith.constant 0 : i32
    return %c0_i32, %c0_i32_0 : i32, i32
  }
  func.func @transform_6(%arg0: i32) -> (i32, i32) {
    %c0_i32 = arith.constant 0 : i32
    %c0_i32_0 = arith.constant 0 : i32
    return %arg0, %c0_i32 : i32, i32
  }
  func.func @transform_7(%arg0: i32) -> (i32, i32) {
    %c0_i32 = arith.constant 0 : i32
    %c0_i32_0 = arith.constant 0 : i32
    %c0_i32_1 = arith.constant 0 : i32
    return %c0_i32, %c0_i32_0 : i32, i32
  }
  func.func @transform_8(%arg0: i32) -> (i32, i32) {
    %c0_i32 = arith.constant 0 : i32
    %c0_i32_0 = arith.constant 0 : i32
    %c0_i32_1 = arith.constant 0 : i32
    return %c0_i32, %c0_i32_0 : i32, i32
  }
  func.func @transform_9(%arg0: i32) -> (i32, i32) {
    %c0_i32 = arith.constant 0 : i32
    %c0_i32_0 = arith.constant 0 : i32
    %c0_i32_1 = arith.constant 0 : i32
    return %c0_i32, %c0_i32_0 : i32, i32
  }
  func.func @transform_10(%arg0: i32) -> (i32, i32) {
    %c0_i32 = arith.constant 0 : i32
    %c0_i32_0 = arith.constant 0 : i32
    return %arg0, %c0_i32 : i32, i32
  }
}

</mosaic_0001>

<bundles_post_ra>
// kernel: tpu_custom_call.1
= control target key start
LH: loop header
LB: loop body
LE: loop exit
PB: predicated region body
PF: predicated region fallthrough
CT: control target
= control target key end

     0   :  { %15 = vsyncpa [#allocation3], 0  ;;  %s1913_s0 = inlined_call_operand.hbm [shape: f32[8,512], index: 0, kind: input, shape index: {}]   ;;  %s1914_s1 = inlined_call_operand.vmem [shape: s32[8,1], index: 1, kind: input, shape index: {}]   ;;  %s1915_s2 = inlined_call_operand.vmem [shape: bf16[32,128], index: 2, kind: input, shape index: {}]   ;;  %s1916_s3 = inlined_call_operand.hbm [shape: bf16[32,128], index: 3, kind: input, shape index: {}]   ;;  %s1917_s4 = inlined_call_operand.hbm [shape: bf16[32,128], index: 4, kind: input, shape index: {}]   ;;  %s1918_s5 = inlined_call_operand.vmem [shape: f32[1,128], index: 5, kind: input, shape index: {}]   ;;  %s1919_s6 = inlined_call_operand.hbm [shape: f32[8,32], index: 6, kind: input, shape index: {}]   ;;  %s1920_s7 = inlined_call_operand.vmem [shape: bf16[32,32], index: 7, kind: input, shape index: {}]   ;;  %s1921_s8 = inlined_call_operand.hbm [shape: bf16[32,128], index: 8, kind: input, shape index: {}]   ;;  %s1922_s9 = inlined_call_operand.vmem [shape: f32[1,128], index: 9, kind: input, shape index: {}]   ;;  %s1923_s10 = inlined_call_operand.hbm [shape: f32[8,128], index: 10, kind: output, shape index: {}]  }
   0x1   :  { %16 = vsyncpa [#allocation6], 0 }
   0x2   :  { %17 = vsyncpa [#allocation9], 0 }
   0x3   :  { %18 = vsyncpa [#allocation4], 0  ;;  %s1496_s13 = smov [#allocation5]   ;;  %s1356_s17 = scalar_lea.hbm %s1916_s3, 256 }
   0x4   :  { %s38_s14 = sshll.u32 %s1496_s13, 4  ;;  %p1357_p0 = scmp.ne.s32.totalorder %s1916_s3, %s1356_s17  ;;  %s39_s14 = int_to_ptr.vmem [resolvable:$true] %s38_s14 }
   0x5   :  { %p1360_p1 = scmp.lt.u32.totalorder %s1356_s17, %s1916_s3 }
   0x7   :  { %p1362_p2 = pnand %p1360_p1, %p1357_p0 }
   0x9   :  { %1365 = shalt.err (!%p1362_p2)
}
   0xa   :  { %s1366_s22 = scalar_lea.vmem %s39_s14, 256  ;;  %p1371_p4 = scmp.lt.s32.totalorder %s39_s14, %s39_s14 }
   0xb   :  { %p1367_p3 = scmp.ne.s32.totalorder %s39_s14, %s1366_s22  ;;  %p1372_p5 = scmp.lt.s32.totalorder %s1366_s22, %s1366_s22 }
   0xd   :  { %p1373_p6 = por %p1372_p5, %p1371_p4 }
   0xf   :  { %p1374_p7 = pnand %p1373_p6, %p1367_p3 }
  0x11   :  { %1377 = shalt.err (!%p1374_p7)
}
  0x12   :  { %s1497_s23 = smov 64   ;;  %s1498_s24 = smov 4  }
  0x13   :  { %44 = dma.hbm_to_vmem [thread:$0]  %s1916_s3, 256, %s39_s14, [#allocation6], %s1497_s23, %s1497_s23, %s1498_s24  }
  0x14   :  { %s1499_s27 = smov [#allocation8]   ;;  %s1500_s29 = smov [#allocation2]  }
  0x15   :  { %s65_s28 = sshll.u32 %s1499_s27, 4  ;;  %s25_s30 = sshll.u32 %s1500_s29, 4  ;;  %s66_s28 = int_to_ptr.vmem [resolvable:$true] %s65_s28  ;;  %s26_s30 = int_to_ptr.vmem [resolvable:$true] %s25_s30 }
  0x16   :  { %s1378_s13 = scalar_lea.hbm %s1919_s6, 128 }
  0x17   :  { %p1379_p8 = scmp.ne.s32.totalorder %s1919_s6, %s1378_s13  ;;  %p1382_p9 = scmp.lt.u32.totalorder %s1378_s13, %s1919_s6 }
  0x19   :  { %p1384_p10 = pnand %p1382_p9, %p1379_p8 }
  0x1b   :  { %1387 = shalt.err (!%p1384_p10)
}
  0x1c   :  { %s1388_s3 = scalar_lea.vmem %s66_s28, 128  ;;  %p1393_p12 = scmp.lt.s32.totalorder %s66_s28, %s66_s28 }
  0x1d   :  { %p1389_p11 = scmp.ne.s32.totalorder %s66_s28, %s1388_s3  ;;  %p1394_p13 = scmp.lt.s32.totalorder %s1388_s3, %s1388_s3 }
  0x1f   :  { %p1395_p0 = por %p1394_p13, %p1393_p12 }
  0x21   :  { %p1396_p1 = pnand %p1395_p0, %p1389_p11 }
  0x23   :  { %1399 = shalt.err (!%p1396_p1)
}
  0x24   :  { %68 = dma.hbm_to_vmem [thread:$0]  %s1919_s6, 128, %s66_s28, [#allocation9]  }
  0x25   :  { %s1400_s22 = scalar_lea.hbm %s1913_s0, 512 }
  0x26   :  { %p1401_p2 = scmp.ne.s32.totalorder %s1913_s0, %s1400_s22  ;;  %p1404_p3 = scmp.lt.u32.totalorder %s1400_s22, %s1913_s0 }
  0x28   :  { %p1406_p4 = pnand %p1404_p3, %p1401_p2 }
  0x2a   :  { %1409 = shalt.err (!%p1406_p4)
}
  0x2b   :  { %s1410_s11 = scalar_lea.vmem %s26_s30, 512  ;;  %p1415_p6 = scmp.lt.s32.totalorder %s26_s30, %s26_s30 }
  0x2c   :  { %p1411_p5 = scmp.ne.s32.totalorder %s26_s30, %s1410_s11  ;;  %p1416_p7 = scmp.lt.s32.totalorder %s1410_s11, %s1410_s11 }
  0x2e   :  { %p1417_p8 = por %p1416_p7, %p1415_p6 }
  0x30   :  { %p1418_p9 = pnand %p1417_p8, %p1411_p5 }
  0x32   :  { %1421 = shalt.err (!%p1418_p9)
}
  0x33   :  { %28 = dma.hbm_to_vmem [thread:$0]  %s1913_s0, 512, %s26_s30, [#allocation3]  }
  0x34   :  { %s1501_s12 = smov [#allocation7]   ;;  %s1502_s15 = smov [#allocation10]  }
  0x35   :  { %s50_s13 = sshll.u32 %s1501_s12, 4  ;;  %s76_s16 = sshll.u32 %s1502_s15, 4  ;;  %s51_s13 = int_to_ptr.vmem [resolvable:$true] %s50_s13  ;;  %s77_s16 = int_to_ptr.vmem [resolvable:$true] %s76_s16 }
  0x36   :  { %s1422_s3 = scalar_lea.hbm %s1917_s4, 256 }
  0x37   :  { %p1423_p10 = scmp.ne.s32.totalorder %s1917_s4, %s1422_s3  ;;  %p1426_p11 = scmp.lt.u32.totalorder %s1422_s3, %s1917_s4 }
  0x39   :  { %p1428_p12 = pnand %p1426_p11, %p1423_p10 }
  0x3b   :  { %1431 = shalt.err (!%p1428_p12)
}
  0x3c   :  { %s1432_s0 = scalar_lea.vmem %s51_s13, 256  ;;  %p1437_p0 = scmp.lt.s32.totalorder %s51_s13, %s51_s13 }
  0x3d   :  { %p1433_p13 = scmp.ne.s32.totalorder %s51_s13, %s1432_s0  ;;  %p1438_p1 = scmp.lt.s32.totalorder %s1432_s0, %s1432_s0 }
  0x3f   :  { %p1439_p2 = por %p1438_p1, %p1437_p0 }
  0x41   :  { %p1440_p3 = pnand %p1439_p2, %p1433_p13 }
  0x43   :  { %1443 = shalt.err (!%p1440_p3)
}
  0x44   :  { %56 = dma.hbm_to_vmem [thread:$0]  %s1917_s4, 256, %s51_s13, [#allocation6], %s1497_s23, %s1497_s23, %s1498_s24  }
  0x45   :  { %s1444_s27 = scalar_lea.hbm %s1921_s8, 256 }
  0x46   :  { %p1445_p4 = scmp.ne.s32.totalorder %s1921_s8, %s1444_s27  ;;  %p1448_p5 = scmp.lt.u32.totalorder %s1444_s27, %s1921_s8 }
  0x48   :  { %p1450_p6 = pnand %p1448_p5, %p1445_p4 }
  0x4a   :  { %1453 = shalt.err (!%p1450_p6)
}
  0x4b   :  { %s1454_s12 = scalar_lea.vmem %s77_s16, 256  ;;  %p1459_p8 = scmp.lt.s32.totalorder %s77_s16, %s77_s16 }
  0x4c   :  { %p1455_p7 = scmp.ne.s32.totalorder %s77_s16, %s1454_s12  ;;  %p1460_p9 = scmp.lt.s32.totalorder %s1454_s12, %s1454_s12 }
  0x4e   :  { %p1461_p10 = por %p1460_p9, %p1459_p8 }
  0x50   :  { %p1462_p11 = pnand %p1461_p10, %p1455_p7 }
  0x52   :  { %1465 = shalt.err (!%p1462_p11)
}
  0x53   :  { %82 = dma.hbm_to_vmem [thread:$0]  %s1921_s8, 256, %s77_s16, [#allocation9], %s1497_s23, %s1497_s23, %s1498_s24  }
  0x54   :  { %1488 = dma.done.wait [#allocation3], 512  }
  0x55   :  { %1489 = vsyncadd [#allocation3], 4294966784 }
  0x56   :  { %1490 = dma.done.wait [#allocation6], 512  }
  0x57   :  { %1491 = vsyncadd [#allocation6], 4294966784 }
  0x58   :  { %1492 = dma.done.wait [#allocation9], 384  }
  0x59   :  { %1493 = vsyncadd [#allocation9], 4294966912  ;;  %v1503_v0 = vmov 0.0   ;;  %vm1504_vm0 = vmmov 0   ;;  %v1505_v1 = vmov 0   ;;  %v1643_v2 = vld [vmem:[%s1915_s2] sm:$0xff]  }
  0x5a   :  { %1156 = vmatprep.subr.bf16.mxu0 %v1503_v0  ;;  %1160 = vmatprep.mubr.msk.bf16.mxu0 %vm1504_vm0, %v1503_v0  ;;  %v1649_v3 = vld [vmem:[%s1915_s2 + $0x8] sm:$0xff]   ;;  %v1660_v4 = vld [vmem:[%s1914_s1] sm:$0xff]  ;;  %s1506_s2 = smov 32   ;;  %v1671_v23 = vld [vmem:[#allocation7] sm:$0xff]   ;;  %vm129_vm3 = vcmask 261120  }
  0x5b   :  { %1280 = vset.pattern.permute.xlu1 %v1505_v1  ;;  %1164 = vmatprep.subr.bf16.mxu1 %v1503_v0  ;;  %vm115_vm1 = vcmp.gt.s32.totalorder %v1660_v4, 0  ;;  %v116_v6 = vld [vmem:[#allocation2] sm:$0xff]  ;;  %v1674_v24 = vld [vmem:[#allocation5 + $0x8] sm:$0xff]   ;;  %v1677_v25 = vld [vmem:[#allocation7 + $0x8] sm:$0xff]   ;;  %vm349_vm4 = vcmp.gt.s32.totalorder %v1660_v4, 1  ;;  %vm544_vm6 = vcmp.gt.s32.totalorder %v1660_v4, 2 }
  0x5c   :  { %1168 = vmatprep.mubr.msk.bf16.mxu1 %vm1504_vm0, %v1503_v0  ;;  %1281 = vset.pattern.permute.xlu0 %v1505_v1  ;;  %v198_v5 = vsel %vm115_vm1, 1, %v1505_v1  ;;  %v1669_v22 = vld [vmem:[#allocation5] sm:$0xff]   ;;  %v350_v37 = vld [vmem:[#allocation2 + $0x8] sm:$0xff]  ;;  %vm739_vm8 = vcmp.gt.s32.totalorder %v1660_v4, 3 }
  0x5d   :  { %1157 = vmatpush3.bf16.msra.mxu0 %v1643_v2  ;;  %200 = vperm.xlu1 %1280, %v198_v5   ;;  %v1720_v38 = vld [vmem:[%s1918_s5] ss:$0 sm:$0xff]  ;;  %v416_v5 = vsel %vm349_vm4, 1, %v1505_v1 }
  0x5e   :  { %1158 = vmatprep.subr.bf16.mxu0 %v1503_v0  ;;  %1165 = vmatpush3.bf16.msra.mxu1 %v1669_v22 }
  0x5f   :  { %1166 = vmatprep.subr.bf16.mxu1 %v1503_v0 }
  0x61   :  { %1159 = vmatpush3.bf16.msra.mxu0 %v1649_v3 }
  0x62   :  { %1172 = vmatprep.subr.bf16.mxu0 %v1503_v0  ;;  %1167 = vmatpush3.bf16.msra.mxu1 %v1674_v24 }
  0x63   :  { %1180 = vmatprep.subr.bf16.mxu1 %v1503_v0 }
  0x64   :  { %1161 = vmatmul.mubr.bf16.vlgmr.msra.gmra.mrb[0].mxu0 %v1505_v1 }
  0x65   :  { %1176 = vmatprep.mubr.msk.bf16.mxu0 %vm1504_vm0, %v1503_v0  ;;  %1173 = vmatpush3.bf16.msra.mxu0 %v1671_v23 }
  0x66   :  { %1174 = vmatprep.subr.bf16.mxu0 %v1503_v0  ;;  %1169 = vmatmul.mubr.bf16.vlgmr.msra.gmra.mrb[0].mxu1 %v1505_v1 }
  0x67   :  { %1181 = vmatpush3.bf16.msra.mxu1 %v1643_v2  ;;  %1184 = vmatprep.mubr.msk.bf16.mxu1 %vm1504_vm0, %v1503_v0 }
  0x68   :  { %1182 = vmatprep.subr.bf16.mxu1 %v1503_v0 }
  0x69   :  { %1175 = vmatpush3.bf16.msra.mxu0 %v1677_v25 }
  0x6a   :  { %1188 = vmatprep.subr.bf16.mxu0 %v1503_v0 }
  0x6b   :  { %1183 = vmatpush3.bf16.msra.mxu1 %v1649_v3 }
  0x6c   :  { %1196 = vmatprep.subr.bf16.mxu1 %v1503_v0 }
  0xdc   :  { %v1693_v27 = vpop.permute.xlu1 %200 }
  0xdd   :  { %vm202_vm2 = vcmp.eq.s32.totalorder %v1693_v27, 1 }
 0x137   :  { %v167_v7 = vpop.f32.mrb[0].mxu0 }
 0x138   :  { %v173_v8 = vadd.f32 %v167_v7, %v116_v6  ;;  %v1162_v9 = vpop.f32.mrb[1].mxu0 }
 0x139   :  { %v170_v10 = vpop.f32.mrb[2].mxu0  ;;  %v252_v32 = vpop.f32.mrb[0].mxu1 }
 0x13a   :  { %1292 = vtanh.f32 %v173_v8  ;;  %v1163_v11 = vpop.f32.mrb[3].mxu0  ;;  %v1084_v13 = vmul.f32 -1.442695, %v173_v8  ;;  %v1170_v33 = vpop.f32.mrb[1].mxu1 }
 0x13b   :  { %v255_v34 = vpop.f32.mrb[2].mxu1 }
 0x13c   :  { %1294 = vpow2.f32 %v1084_v13  ;;  %v1171_v35 = vpop.f32.mrb[3].mxu1 }
 0x144   :  { %v1293_v12 = vpop.eup %1292 }
 0x145   :  { %183 = vrot.lane.b32.xlu0 %v1293_v12, %s1506_s2 }
 0x146   :  { %v1295_v14 = vpop.eup %1294 }
 0x147   :  { %v177_v15 = vadd.f32 1.0, %v1295_v14 }
 0x149   :  { %1296 = vrcp.f32 %v177_v15 }
 0x153   :  { %v1297_v16 = vpop.eup %1296 }
 0x154   :  { %v181_v19 = vmul.f32 0.0, %v1297_v16 }
 0x1b7   :  { %v184_v17 = vpop.permute.xlu0 %183 }
 0x1b8   :  { %v186_v18 = vmul.f32 %v1297_v16, %v184_v17 }
 0x1ba   :  { %188 = vrot.lane.b32.xlu0 %v186_v18, %s1506_s2 }
 0x22c   :  { %v189_v20 = vpop.permute.xlu0 %188 }
 0x22d   :  { %v1666_v21 = vadd.f32 %v189_v20, %v181_v19 }
 0x22f   :  { %1298 = vtanh.f32 %v1666_v21  ;;  %v1732_v6 = vsel %vm202_vm2, %v1666_v21, 0.0 }
 0x239   :  { %v1299_v26 = vpop.eup %1298 }
 0x23a   :  { %194 = vrot.lane.b32.xlu1 %v1299_v26, %s1506_s2 }
 0x2ac   :  { %v195_v28 = vpop.permute.xlu1 %194 }
 0x2ad   :  { %v197_v29 = vmul.f32 %v1297_v16, %v195_v28 }
 0x2af   :  { %v1698_v30 = vsel %vm202_vm2, %v197_v29, 0.0 }
 0x2b0   :  { %v205_v31 = vpack.c.bf16 %v1698_v30, %v1698_v30 }
 0x2b2   :  { %259 = vrot.lane.b32.xlu0 %v205_v31, %s1497_s23 }
 0x324   :  { %v260_v36 = vpop.permute.xlu0 %259 }
 0x325   :  { %1177 = vmatmul.mubr.msk.bf16.vlgmr.msra.gmra.mrb[4].mxu0 %vm129_vm3, %v260_v36  ;;  %1185 = vmatmul.mubr.msk.bf16.vlgmr.msra.gmra.mrb[4].mxu1 %vm129_vm3, %v260_v36 }
 0x326   :  { %1197 = vmatpush3.bf16.msra.mxu1 %v1671_v23  ;;  %1189 = vmatpush3.bf16.msra.mxu0 %v1669_v22 }
 0x327   :  { %1198 = vmatprep.subr.bf16.mxu1 %v1503_v0  ;;  %1190 = vmatprep.subr.bf16.mxu0 %v1503_v0 }
 0x328   :  { %1200 = vmatprep.mubr.msk.bf16.mxu1 %vm1504_vm0, %v1503_v0  ;;  %1192 = vmatprep.mubr.msk.bf16.mxu0 %vm1504_vm0, %v1503_v0 }
 0x32a   :  { %1199 = vmatpush3.bf16.msra.mxu1 %v1677_v25  ;;  %1191 = vmatpush3.bf16.msra.mxu0 %v1674_v24 }
 0x32b   :  { %1204 = vmatprep.subr.bf16.mxu0 %v1503_v0  ;;  %1212 = vmatprep.subr.bf16.mxu1 %v1503_v0 }
 0x3f8   :  { %v310_v39 = vpop.f32.mrb[4].mxu0  ;;  %v385_v40 = vpop.f32.mrb[4].mxu1 }
 0x3f9   :  { %v311_v41 = vadd.f32 %v310_v39, %v252_v32  ;;  %v391_v42 = vadd.f32 %v385_v40, %v350_v37  ;;  %v1178_v43 = vpop.f32.mrb[5].mxu0  ;;  %v1186_v44 = vpop.f32.mrb[5].mxu1 }
 0x3fa   :  { %v313_v45 = vpop.f32.mrb[6].mxu0  ;;  %v388_v46 = vpop.f32.mrb[6].mxu1 }
 0x3fb   :  { %v322_v47 = vadd.f32 %v1720_v38, %v311_v41  ;;  %1300 = vtanh.f32 %v391_v42  ;;  %v1179_v48 = vpop.f32.mrb[7].mxu0  ;;  %v1187_v49 = vpop.f32.mrb[7].mxu1  ;;  %v1093_v52 = vmul.f32 -1.442695, %v391_v42  ;;  %v545_v42 = vld [vmem:[#allocation2 + $0x10] sm:$0xff] }
 0x3fd   :  { %1302 = vtanh.f32 %v322_v47  ;;  %v1091_v53 = vmul.f32 -1.442695, %v322_v47 }
 0x3fe   :  { %1304 = vpow2.f32 %v1093_v52 }
 0x3ff   :  { %1306 = vpow2.f32 %v1091_v53 }
 0x405   :  { %v1301_v50 = vpop.eup %1300 }
 0x406   :  { %401 = vrot.lane.b32.xlu0 %v1301_v50, %s1506_s2 }
 0x407   :  { %v1303_v51 = vpop.eup %1302 }
 0x408   :  { %332 = vrot.lane.b32.xlu1 %v1303_v51, %s1506_s2  ;;  %v1305_v54 = vpop.eup %1304 }
 0x409   :  { %v1307_v55 = vpop.eup %1306  ;;  %v395_v56 = vadd.f32 1.0, %v1305_v54 }
 0x40a   :  { %v326_v57 = vadd.f32 1.0, %v1307_v55 }
 0x40b   :  { %1308 = vrcp.f32 %v395_v56 }
 0x40c   :  { %1310 = vrcp.f32 %v326_v57 }
 0x415   :  { %v1309_v58 = vpop.eup %1308 }
 0x416   :  { %v1311_v61 = vpop.eup %1310  ;;  %v399_v7 = vmul.f32 %v1309_v58, %v1732_v6 }
 0x417   :  { %v330_v10 = vmul.f32 0.0, %v1311_v61 }
 0x478   :  { %v402_v59 = vpop.permute.xlu0 %401 }
 0x479   :  { %v404_v60 = vmul.f32 %v1309_v58, %v402_v59 }
 0x47a   :  { %v333_v62 = vpop.permute.xlu1 %332 }
 0x47b   :  { %v335_v63 = vmul.f32 %v1311_v61, %v333_v62  ;;  %406 = vrot.lane.b32.xlu0 %v404_v60, %s1506_s2  ;;  %v611_v62 = vsel %vm544_vm6, 1, %v1505_v1 }
 0x47d   :  { %337 = vrot.lane.b32.xlu1 %v335_v63, %s1506_s2 }
 0x481   :  { %418 = vperm.xlu1 %1280, %v416_v5  }
 0x4ed   :  { %v407_v8 = vpop.permute.xlu0 %406 }
 0x4ee   :  { %v1735_v9 = vadd.f32 %v407_v8, %v399_v7 }
 0x4ef   :  { %v338_v11 = vpop.permute.xlu1 %337 }
 0x4f0   :  { %1312 = vtanh.f32 %v1735_v9  ;;  %v1738_v12 = vadd.f32 %v338_v11, %v330_v10 }
 0x4f2   :  { %1314 = vtanh.f32 %v1738_v12  ;;  %v1792_v63 = vsel %vm202_vm2, %v1738_v12, 0.0 }
 0x4fa   :  { %v1313_v13 = vpop.eup %1312 }
 0x4fb   :  { %412 = vrot.lane.b32.xlu1 %v1313_v13, %s1506_s2 }
 0x4fc   :  { %v1315_v14 = vpop.eup %1314 }
 0x4fd   :  { %343 = vrot.lane.b32.xlu0 %v1315_v14, %s1506_s2 }
 0x500   :  { %v1743_v15 = vpop.permute.xlu1 %418 }
 0x501   :  { %vm420_vm5 = vcmp.eq.s32.totalorder %v1743_v15, 1 }
 0x502   :  { %v1802_v10 = vsel %vm420_vm5, %v1735_v9, %v1732_v6 }
 0x56d   :  { %v413_v16 = vpop.permute.xlu1 %412 }
 0x56e   :  { %v415_v17 = vmul.f32 %v1309_v58, %v413_v16 }
 0x56f   :  { %v344_v18 = vpop.permute.xlu0 %343 }
 0x570   :  { %v346_v19 = vmul.f32 %v1311_v61, %v344_v18  ;;  %v1749_v20 = vsel %vm420_vm5, %v415_v17, %v1698_v30 }
 0x571   :  { %v423_v21 = vpack.c.bf16 %v1749_v20, %v1749_v20 }
 0x572   :  { %v1755_v26 = vsel %vm202_vm2, %v346_v19, 0.0 }
 0x573   :  { %472 = vrot.lane.b32.xlu1 %v423_v21, %s1497_s23  ;;  %v424_v28 = vpack.c.bf16 %v1755_v26, %v1755_v26 }
 0x575   :  { %426 = vrot.lane.b32.xlu0 %v424_v28, %s1497_s23 }
 0x5e5   :  { %v473_v29 = vpop.permute.xlu1 %472 }
 0x5e6   :  { %1201 = vmatmul.mubr.msk.bf16.vlgmr.msra.gmra.mrb[8].mxu1 %vm129_vm3, %v473_v29 }
 0x5e7   :  { %v427_v31 = vpop.permute.xlu0 %426  ;;  %1213 = vmatpush3.bf16.msra.mxu1 %v1669_v22  ;;  %1216 = vmatprep.mubr.msk.bf16.mxu1 %vm1504_vm0, %v1503_v0 }
 0x5e8   :  { %1193 = vmatmul.mubr.msk.bf16.vlgmr.msra.gmra.mrb[8].mxu0 %vm129_vm3, %v427_v31  ;;  %1214 = vmatprep.subr.bf16.mxu1 %v1503_v0 }
 0x5e9   :  { %1205 = vmatpush3.bf16.msra.mxu0 %v1643_v2  ;;  %1208 = vmatprep.mubr.msk.bf16.mxu0 %vm1504_vm0, %v1503_v0 }
 0x5ea   :  { %1206 = vmatprep.subr.bf16.mxu0 %v1503_v0 }
 0x5eb   :  { %1215 = vmatpush3.bf16.msra.mxu1 %v1674_v24 }
 0x5ec   :  { %1228 = vmatprep.subr.bf16.mxu1 %v1503_v0 }
 0x5ed   :  { %1207 = vmatpush3.bf16.msra.mxu0 %v1649_v3 }
 0x5ee   :  { %1220 = vmatprep.subr.bf16.mxu0 %v1503_v0 }
 0x5f0   :  { %1209 = vmatmul.mubr.msk.bf16.vlgmr.msra.gmra.mrb[12].mxu0 %vm129_vm3, %v473_v29 }
 0x5f1   :  { %1221 = vmatpush3.bf16.msra.mxu0 %v1671_v23  ;;  %1224 = vmatprep.mubr.msk.bf16.mxu0 %vm1504_vm0, %v1503_v0 }
 0x5f2   :  { %1222 = vmatprep.subr.bf16.mxu0 %v1503_v0 }
 0x5f5   :  { %1223 = vmatpush3.bf16.msra.mxu0 %v1677_v25 }
 0x5f6   :  { %1236 = vmatprep.subr.bf16.mxu0 %v1503_v0 }
 0x6b9   :  { %v511_v30 = vpop.f32.mrb[8].mxu1 }
 0x6ba   :  { %v1202_v32 = vpop.f32.mrb[9].mxu1 }
 0x6bb   :  { %v465_v33 = vpop.f32.mrb[8].mxu0  ;;  %v514_v34 = vpop.f32.mrb[10].mxu1  ;;  %v740_v32 = vld [vmem:[#allocation2 + $0x18] sm:$0xff] }
 0x6bc   :  { %v512_v35 = vadd.f32 %v511_v30, %v465_v33  ;;  %v1194_v36 = vpop.f32.mrb[9].mxu0  ;;  %v1203_v37 = vpop.f32.mrb[11].mxu1 }
 0x6bd   :  { %v468_v39 = vpop.f32.mrb[10].mxu0 }
 0x6be   :  { %v517_v40 = vadd.f32 %v1720_v38, %v512_v35  ;;  %v1195_v41 = vpop.f32.mrb[11].mxu0 }
 0x6c0   :  { %1316 = vtanh.f32 %v517_v40  ;;  %v1096_v50 = vmul.f32 -1.442695, %v517_v40 }
 0x6c3   :  { %v580_v43 = vpop.f32.mrb[12].mxu0 }
 0x6c4   :  { %v586_v44 = vadd.f32 %v580_v43, %v545_v42  ;;  %v1210_v45 = vpop.f32.mrb[13].mxu0 }
 0x6c5   :  { %v583_v46 = vpop.f32.mrb[14].mxu0 }
 0x6c6   :  { %1318 = vtanh.f32 %v586_v44  ;;  %v1211_v47 = vpop.f32.mrb[15].mxu0  ;;  %v1098_v51 = vmul.f32 -1.442695, %v586_v44 }
 0x6c7   :  { %1320 = vpow2.f32 %v1096_v50 }
 0x6c8   :  { %1322 = vpow2.f32 %v1098_v51 }
 0x6ca   :  { %v1317_v48 = vpop.eup %1316 }
 0x6cb   :  { %527 = vrot.lane.b32.xlu0 %v1317_v48, %s1506_s2 }
 0x6d0   :  { %v1319_v49 = vpop.eup %1318 }
 0x6d1   :  { %596 = vrot.lane.b32.xlu1 %v1319_v49, %s1506_s2  ;;  %v1321_v52 = vpop.eup %1320 }
 0x6d2   :  { %v521_v53 = vadd.f32 1.0, %v1321_v52  ;;  %v1323_v54 = vpop.eup %1322 }
 0x6d3   :  { %v590_v55 = vadd.f32 1.0, %v1323_v54 }
 0x6d4   :  { %1324 = vrcp.f32 %v521_v53 }
 0x6d5   :  { %1326 = vrcp.f32 %v590_v55  ;;  %v806_v55 = vsel %vm739_vm8, 1, %v1505_v1 }
 0x6de   :  { %v1325_v56 = vpop.eup %1324 }
 0x6df   :  { %v1327_v59 = vpop.eup %1326  ;;  %v525_v5 = vmul.f32 %v1325_v56, %v1792_v63 }
 0x6e0   :  { %v594_v11 = vmul.f32 %v1327_v59, %v1802_v10 }
 0x73d   :  { %v528_v57 = vpop.permute.xlu0 %527 }
 0x73e   :  { %v530_v58 = vmul.f32 %v1325_v56, %v528_v57 }
 0x740   :  { %532 = vrot.lane.b32.xlu0 %v530_v58, %s1506_s2 }
 0x743   :  { %v597_v60 = vpop.permute.xlu1 %596 }
 0x744   :  { %v599_v61 = vmul.f32 %v1327_v59, %v597_v60 }
 0x746   :  { %601 = vrot.lane.b32.xlu1 %v599_v61, %s1506_s2 }
 0x74a   :  { %613 = vperm.xlu1 %1280, %v611_v62  }
 0x7b2   :  { %v533_v7 = vpop.permute.xlu0 %532 }
 0x7b3   :  { %v1795_v8 = vadd.f32 %v533_v7, %v525_v5 }
 0x7b5   :  { %1328 = vtanh.f32 %v1795_v8 }
 0x7b8   :  { %v602_v13 = vpop.permute.xlu1 %601 }
 0x7b9   :  { %v1805_v14 = vadd.f32 %v602_v13, %v594_v11 }
 0x7bb   :  { %1330 = vtanh.f32 %v1805_v14 }
 0x7bf   :  { %v1329_v27 = vpop.eup %1328 }
 0x7c0   :  { %538 = vrot.lane.b32.xlu0 %v1329_v27, %s1506_s2 }
 0x7c5   :  { %v1331_v12 = vpop.eup %1330 }
 0x7c6   :  { %607 = vrot.lane.b32.xlu0 %v1331_v12, %s1506_s2 }
 0x7c9   :  { %v1817_v18 = vpop.permute.xlu1 %613 }
 0x7ca   :  { %vm615_vm7 = vcmp.eq.s32.totalorder %v1817_v18, 1  ;;  %v1290_v18 = vld [vmem:[#allocation10] sm:$0xff]  }
 0x7cb   :  { %v617_v57 = vsel %vm615_vm7, %v1805_v14, %v1802_v10 }
 0x832   :  { %v539_v16 = vpop.permute.xlu0 %538 }
 0x833   :  { %v541_v17 = vmul.f32 %v1325_v56, %v539_v16  ;;  %v543_v56 = vsel %vm420_vm5, %v1795_v8, %v1792_v63 }
 0x835   :  { %v1813_v6 = vsel %vm420_vm5, %v541_v17, %v1755_v26 }
 0x836   :  { %v619_v9 = vpack.c.bf16 %v1813_v6, %v1813_v6 }
 0x838   :  { %621 = vrot.lane.b32.xlu1 %v619_v9, %s1497_s23  ;;  %v608_v19 = vpop.permute.xlu0 %607 }
 0x839   :  { %v610_v21 = vmul.f32 %v1327_v59, %v608_v19 }
 0x83b   :  { %v1824_v28 = vsel %vm615_vm7, %v610_v21, %v1749_v20 }
 0x83c   :  { %v618_v26 = vpack.c.bf16 %v1824_v28, %v1824_v28 }
 0x83e   :  { %667 = vrot.lane.b32.xlu0 %v618_v26, %s1497_s23 }
 0x8aa   :  { %v622_v29 = vpop.permute.xlu1 %621 }
 0x8ab   :  { %1217 = vmatmul.mubr.msk.bf16.vlgmr.msra.gmra.mrb[12].mxu1 %vm129_vm3, %v622_v29 }
 0x8ac   :  { %1229 = vmatpush3.bf16.msra.mxu1 %v1643_v2  ;;  %1232 = vmatprep.mubr.msk.bf16.mxu1 %vm1504_vm0, %v1503_v0 }
 0x8ad   :  { %1230 = vmatprep.subr.bf16.mxu1 %v1503_v0 }
 0x8b0   :  { %1231 = vmatpush3.bf16.msra.mxu1 %v1649_v3  ;;  %v668_v31 = vpop.permute.xlu0 %667 }
 0x8b1   :  { %1225 = vmatmul.mubr.msk.bf16.vlgmr.msra.gmra.mrb[16].mxu0 %vm129_vm3, %v668_v31  ;;  %1244 = vmatprep.subr.bf16.mxu1 %v1503_v0 }
 0x8b2   :  { %1237 = vmatpush3.bf16.msra.mxu0 %v1669_v22  ;;  %1240 = vmatprep.mubr.msk.bf16.mxu0 %vm1504_vm0, %v1503_v0 }
 0x8b3   :  { %1233 = vmatmul.mubr.msk.bf16.vlgmr.msra.gmra.mrb[16].mxu1 %vm129_vm3, %v668_v31  ;;  %1238 = vmatprep.subr.bf16.mxu0 %v1503_v0 }
 0x8b4   :  { %1245 = vmatpush3.bf16.msra.mxu1 %v1671_v23  ;;  %1248 = vmatprep.mubr.msk.bf16.mxu1 %vm1504_vm0, %v1503_v0 }
 0x8b5   :  { %1246 = vmatprep.subr.bf16.mxu1 %v1503_v0 }
 0x8b6   :  { %1239 = vmatpush3.bf16.msra.mxu0 %v1674_v24 }
 0x8b7   :  { %1252 = vmatprep.subr.bf16.mxu0 %v1503_v0 }
 0x8b8   :  { %1247 = vmatpush3.bf16.msra.mxu1 %v1677_v25 }
 0x8b9   :  { %1260 = vmatprep.subr.bf16.mxu1 %v1503_v0 }
 0x97e   :  { %v660_v2 = vpop.f32.mrb[12].mxu1 }
 0x97f   :  { %v1218_v3 = vpop.f32.mrb[13].mxu1 }
 0x980   :  { %v663_v22 = vpop.f32.mrb[14].mxu1 }
 0x981   :  { %v1219_v20 = vpop.f32.mrb[15].mxu1 }
 0x984   :  { %v706_v30 = vpop.f32.mrb[16].mxu0 }
 0x985   :  { %v707_v23 = vadd.f32 %v706_v30, %v660_v2  ;;  %v1226_v33 = vpop.f32.mrb[17].mxu0 }
 0x986   :  { %v709_v34 = vpop.f32.mrb[18].mxu0  ;;  %v775_v35 = vpop.f32.mrb[16].mxu1 }
 0x987   :  { %v712_v36 = vadd.f32 %v1720_v38, %v707_v23  ;;  %v781_v37 = vadd.f32 %v775_v35, %v740_v32  ;;  %v1227_v24 = vpop.f32.mrb[19].mxu0  ;;  %v1234_v39 = vpop.f32.mrb[17].mxu1 }
 0x988   :  { %v778_v40 = vpop.f32.mrb[18].mxu1  ;;  %v1289_v24 = vld [vmem:[%s1920_s7 + $0x8] sm:$0xff]  }
 0x989   :  { %1332 = vtanh.f32 %v712_v36  ;;  %v1235_v25 = vpop.f32.mrb[19].mxu1  ;;  %v1101_v43 = vmul.f32 -1.442695, %v712_v36  ;;  %v1103_v44 = vmul.f32 -1.442695, %v781_v37 }
 0x98a   :  { %1334 = vtanh.f32 %v781_v37  ;;  %v1288_v37 = vld [vmem:[%s1920_s7] sm:$0xff]  }
 0x98b   :  { %1336 = vpow2.f32 %v1101_v43 }
 0x98c   :  { %1338 = vpow2.f32 %v1103_v44  ;;  %v1291_v44 = vld [vmem:[#allocation10 + $0x8] sm:$0xff]  }
 0x993   :  { %v1333_v41 = vpop.eup %1332 }
 0x994   :  { %v1335_v42 = vpop.eup %1334  ;;  %722 = vrot.lane.b32.xlu1 %v1333_v41, %s1506_s2 }
 0x995   :  { %791 = vrot.lane.b32.xlu0 %v1335_v42, %s1506_s2  ;;  %v1337_v45 = vpop.eup %1336 }
 0x996   :  { %v1339_v46 = vpop.eup %1338  ;;  %v716_v47 = vadd.f32 1.0, %v1337_v45  ;;  %v937_v45 = vld [vmem:[#allocation8] sm:$0xff] }
 0x997   :  { %v785_v48 = vadd.f32 1.0, %v1339_v46 }
 0x998   :  { %1340 = vrcp.f32 %v716_v47 }
 0x999   :  { %1342 = vrcp.f32 %v785_v48 }
 0x9a2   :  { %v1341_v49 = vpop.eup %1340 }
 0x9a3   :  { %v1343_v51 = vpop.eup %1342  ;;  %v720_v58 = vmul.f32 %v1341_v49, %v543_v56 }
 0x9a4   :  { %v789_v4 = vmul.f32 %v1343_v51, %v617_v57 }
 0xa06   :  { %v723_v50 = vpop.permute.xlu1 %722 }
 0xa07   :  { %v792_v52 = vpop.permute.xlu0 %791  ;;  %v725_v53 = vmul.f32 %v1341_v49, %v723_v50 }
 0xa08   :  { %v794_v54 = vmul.f32 %v1343_v51, %v792_v52  ;;  %v1110_v52 = vld [vmem:[%s1922_s9] ss:$0 sm:$0xff] }
 0xa09   :  { %727 = vrot.lane.b32.xlu1 %v725_v53, %s1506_s2 }
 0xa0a   :  { %796 = vrot.lane.b32.xlu0 %v794_v54, %s1506_s2 }
 0xa0d   :  { %808 = vperm.xlu1 %1280, %v806_v55  }
 0xa7b   :  { %v728_v59 = vpop.permute.xlu1 %727 }
 0xa7c   :  { %v797_v60 = vpop.permute.xlu0 %796  ;;  %v730_v61 = vadd.f32 %v728_v59, %v720_v58 }
 0xa7d   :  { %v799_v62 = vadd.f32 %v797_v60, %v789_v4 }
 0xa7e   :  { %1344 = vtanh.f32 %v730_v61  ;;  %v738_v34 = vsel %vm615_vm7, %v730_v61, %v543_v56 }
 0xa7f   :  { %1346 = vtanh.f32 %v799_v62 }
 0xa88   :  { %v1345_v1 = vpop.eup %1344 }
 0xa89   :  { %v1347_v5 = vpop.eup %1346  ;;  %733 = vrot.lane.b32.xlu0 %v1345_v1, %s1506_s2 }
 0xa8a   :  { %802 = vrot.lane.b32.xlu1 %v1347_v5, %s1506_s2 }
 0xa8c   :  { %v809_v15 = vpop.permute.xlu1 %808 }
 0xa8d   :  { %vm810_vm9 = vcmp.eq.s32.totalorder %v809_v15, 1 }
 0xafb   :  { %v734_v63 = vpop.permute.xlu0 %733 }
 0xafc   :  { %v803_v7 = vpop.permute.xlu1 %802  ;;  %v736_v8 = vmul.f32 %v1341_v49, %v734_v63 }
 0xafd   :  { %v805_v11 = vmul.f32 %v1343_v51, %v803_v7 }
 0xafe   :  { %v737_v10 = vsel %vm615_vm7, %v736_v8, %v1813_v6 }
 0xaff   :  { %v811_v13 = vsel %vm810_vm9, %v805_v11, %v1824_v28  ;;  %v813_v14 = vpack.c.bf16 %v737_v10, %v737_v10 }
 0xb00   :  { %v812_v27 = vpack.c.bf16 %v811_v13, %v811_v13 }
 0xb01   :  { %815 = vrot.lane.b32.xlu0 %v813_v14, %s1497_s23 }
 0xb02   :  { %861 = vrot.lane.b32.xlu1 %v812_v27, %s1497_s23 }
 0xb73   :  { %v816_v12 = vpop.permute.xlu0 %815 }
 0xb74   :  { %v862_v16 = vpop.permute.xlu1 %861  ;;  %1241 = vmatmul.mubr.msk.bf16.vlgmr.msra.gmra.mrb[20].mxu0 %vm129_vm3, %v816_v12 }
 0xb75   :  { %1249 = vmatmul.mubr.msk.bf16.vlgmr.msra.gmra.mrb[20].mxu1 %vm129_vm3, %v862_v16  ;;  %1256 = vmatprep.mubr.msk.bf16.mxu0 %vm1504_vm0, %v1503_v0 }
 0xb76   :  { %1264 = vmatprep.mubr.msk.bf16.mxu1 %vm1504_vm0, %v1503_v0  ;;  %1253 = vmatpush3.bf16.msra.mxu0 %v1288_v37 }
 0xb77   :  { %1254 = vmatprep.subr.bf16.mxu0 %v1503_v0  ;;  %1261 = vmatpush3.bf16.msra.mxu1 %v1290_v18 }
 0xb78   :  { %1262 = vmatprep.subr.bf16.mxu1 %v1503_v0 }
 0xb7a   :  { %1255 = vmatpush3.bf16.msra.mxu0 %v1289_v24 }
 0xb7b   :  { %1263 = vmatpush3.bf16.msra.mxu1 %v1291_v44 }
 0xc47   :  { %v854_v17 = vpop.f32.mrb[20].mxu0 }
 0xc48   :  { %v900_v6 = vpop.f32.mrb[20].mxu1  ;;  %v1242_v9 = vpop.f32.mrb[21].mxu0 }
 0xc49   :  { %v901_v19 = vadd.f32 %v900_v6, %v854_v17  ;;  %v1250_v21 = vpop.f32.mrb[21].mxu1  ;;  %v857_v28 = vpop.f32.mrb[22].mxu0 }
 0xc4a   :  { %v903_v26 = vpop.f32.mrb[22].mxu1  ;;  %v1243_v29 = vpop.f32.mrb[23].mxu0 }
 0xc4b   :  { %v906_v31 = vadd.f32 %v1720_v38, %v901_v19  ;;  %v1251_v2 = vpop.f32.mrb[23].mxu1 }
 0xc4d   :  { %1348 = vtanh.f32 %v906_v31  ;;  %v1106_v22 = vmul.f32 -1.442695, %v906_v31 }
 0xc4f   :  { %1350 = vpow2.f32 %v1106_v22 }
 0xc57   :  { %v1349_v3 = vpop.eup %1348 }
 0xc58   :  { %916 = vrot.lane.b32.xlu0 %v1349_v3, %s1506_s2 }
 0xc59   :  { %v1351_v20 = vpop.eup %1350 }
 0xc5a   :  { %v910_v30 = vadd.f32 1.0, %v1351_v20 }
 0xc5c   :  { %1352 = vrcp.f32 %v910_v30 }
 0xc66   :  { %v1353_v32 = vpop.eup %1352 }
 0xc67   :  { %v914_v35 = vmul.f32 %v1353_v32, %v738_v34 }
 0xcca   :  { %v917_v23 = vpop.permute.xlu0 %916 }
 0xccb   :  { %v919_v33 = vmul.f32 %v1353_v32, %v917_v23 }
 0xccd   :  { %921 = vrot.lane.b32.xlu1 %v919_v33, %s1506_s2 }
 0xd3f   :  { %v922_v38 = vpop.permute.xlu1 %921 }
 0xd40   :  { %v924_v36 = vadd.f32 %v922_v38, %v914_v35 }
 0xd42   :  { %1354 = vtanh.f32 %v924_v36 }
 0xd4c   :  { %v1355_v39 = vpop.eup %1354 }
 0xd4d   :  { %927 = vrot.lane.b32.xlu0 %v1355_v39, %s1506_s2 }
 0xdbf   :  { %v928_v40 = vpop.permute.xlu0 %927 }
 0xdc0   :  { %v930_v25 = vmul.f32 %v1353_v32, %v928_v40 }
 0xdc2   :  { %v931_v41 = vsel %vm810_vm9, %v930_v25, %v737_v10 }
 0xdc3   :  { %v932_v42 = vpack.c.bf16 %v931_v41, %v931_v41 }
 0xdc5   :  { %939 = vrot.lane.b32.xlu1 %v932_v42, %s1497_s23  ;;  %s1507_s23 = smov [#allocation11]  }
 0xdc6   :  { %s1071_s0 = sshll.u32 %s1507_s23, 4  ;;  %s1072_s0 = int_to_ptr.vmem [resolvable:$true] %s1071_s0 }
 0xdc7   :  { %s1466_s30 = scalar_lea.vmem %s1072_s0, 128  ;;  %p1471_p13 = scmp.lt.s32.totalorder %s1072_s0, %s1072_s0 }
 0xdc8   :  { %p1467_p12 = scmp.ne.s32.totalorder %s1072_s0, %s1466_s30  ;;  %p1472_p0 = scmp.lt.s32.totalorder %s1466_s30, %s1466_s30 }
 0xdca   :  { %p1473_p1 = por %p1472_p0, %p1471_p13 }
 0xdcc   :  { %p1474_p2 = pnand %p1473_p1, %p1467_p12 }
 0xe37   :  { %v940_v43 = vpop.permute.xlu1 %939 }
 0xe38   :  { %1257 = vmatmul.mubr.msk.bf16.vlgmr.msra.gmra.mrb[24].mxu0 %vm129_vm3, %v940_v43 }
 0xf0b   :  { %v990_v46 = vpop.f32.mrb[24].mxu0 }
 0xf0c   :  { %v991_v47 = vadd.f32 %v990_v46, %v937_v45  ;;  %v1258_v48 = vpop.f32.mrb[25].mxu0 }
 0xf0d   :  { %v993_v49 = vpop.f32.mrb[26].mxu0 }
 0xf0e   :  { %v996_v50 = vmax.f32 %v991_v47, 0.0  ;;  %v1259_v51 = vpop.f32.mrb[27].mxu0 }
 0xf10   :  { %v997_v0 = vpack.c.bf16 %v996_v50, %v996_v50 }
 0xf12   :  { %1265 = vmatmul.mubr.msk.bf16.vlgmr.msra.gmra.mrb[24].mxu1 %vm129_vm3, %v997_v0 }
 0xfe5   :  { %v1058_v53 = vpop.f32.mrb[24].mxu1 }
 0xfe6   :  { %v1059_v54 = vadd.f32 %v1110_v52, %v1058_v53  ;;  %v1266_v55 = vpop.f32.mrb[25].mxu1 }
 0xfe7   :  { %v1061_v56 = vpop.f32.mrb[26].mxu1 }
 0xfe8   :  { %1064 = vst [vmem:[#allocation11] sm:$0xff] %v1059_v54  ;;  %v1267_v57 = vpop.f32.mrb[27].mxu1 }
 0xfe9   :  { %1477 = shalt.err (!%p1474_p2)
}
 0xfea   :  { %s1478_s9 = scalar_lea.hbm %s1923_s10, 128 }
 0xfeb   :  { %p1479_p3 = scmp.ne.s32.totalorder %s1923_s10, %s1478_s9  ;;  %p1482_p4 = scmp.lt.u32.totalorder %s1478_s9, %s1923_s10 }
 0xfed   :  { %p1484_p5 = pnand %p1482_p4, %p1479_p3 }
 0xfef   :  { %1487 = shalt.err (!%p1484_p5)
}
 0xff0   :  { %1074 = dma.vmem_to_hbm [thread:$0]  %s1072_s0, 128, %s1923_s10, [#allocation4]  }
 0xff1   :  { %1494 = dma.done.wait [#allocation4], 128  }
 0xff2   :  { %1495 = vsyncadd [#allocation4], 4294967168 }
 0xff3   :  { %1078 = vsyncpa [#allocation3], 1 }
 0xff4   :  { %1079 = vsyncpa [#allocation6], 1 }
 0xff5   :  { %1080 = vsyncpa [#allocation9], 1 }
 0xff6   :  { %1081 = vsyncpa [#allocation4], 1 }

</bundles_post_ra>
